<compile_context>
chip_gen: v7x
topology: tpu7x:2x2x1
jax: 0.10.0
libtpu: 0.0.40
codegen_flags: <defaults>
</compile_context>

<pallas_src>
import jax
import jax.numpy as jnp
from jax.experimental import pallas as pl
from jax.experimental.pallas import tpu as pltpu


# Max sublane-rows per block: 1024 rows * 128 lanes = 131072 batch elems/block.
# f32 VMEM footprint (x + u + dx) * double-buffering ~= 8 MiB -> fits the
# 32 MiB default scoped VMEM on v7x and leaves huge headroom on v5e/v6e.
MAX_TILE_ROWS = 1024

# Below this batch size a single fused XLA elementwise kernel beats the fixed
# pallas_call + layout-change cost.
_SMALL_BATCH = 8192


def _round_up(n, m):
    return ((n + m - 1) // m) * m


def _unicycle_kernel(x_ref, u_ref, dx_ref):
    """x_ref: (3, TR, 128), u_ref: (2, TR, 128), dx_ref: (3, TR, 128).

    Batch is packed across sublanes (TR) and lanes (128), so every slice below
    is a full 2-D tile: full-width VPU issue for sin/cos and unmasked stores.
    """
    theta = x_ref[2, :, :].astype(jnp.float32)
    v = u_ref[0, :, :].astype(jnp.float32)
    w = u_ref[1, :, :]

    out_dtype = dx_ref.dtype
    # Keep trig in f32 (no bf16 VPU/EUP on v5e).  Padded rows of a partial
    # last block may hold arbitrary bits, but cos/sin of any value is bounded
    # or NaN only in padded rows, which are masked away on writeback.
    dx_ref[0, :, :] = (v * jnp.cos(theta)).astype(out_dtype)
    dx_ref[1, :, :] = (v * jnp.sin(theta)).astype(out_dtype)
    dx_ref[2, :, :] = w.astype(out_dtype)


def unicycle_forward_state_major(x_sm, u_sm):
    """Pallas path on state-major data (no wrapper transposes).

    x_sm: (3, B) = rows [pos_x; pos_y; theta]
    u_sm: (2, B) = rows [v; w]
    returns dx_sm: (3, B) = [v*cos(theta); v*sin(theta); w]
    """
    S, B = x_sm.shape           # S == 3
    C = u_sm.shape[0]           # C == 2

    # Pad batch to a multiple of 128 so it splits into (rows, 128) =
    # (sublane, lane) without any data movement.
    b_pad = _round_up(B, 128)
    if b_pad != B:
        pad = b_pad - B
        x_sm = jnp.pad(x_sm, ((0, 0), (0, pad)))
        u_sm = jnp.pad(u_sm, ((0, 0), (0, pad)))
    rows = b_pad // 128

    # Free (metadata-only) reshapes: batch axis -> sublane x lane.
    x3 = x_sm.reshape(S, rows, 128)
    u3 = u_sm.reshape(C, rows, 128)

    # Block sizing: as large as comfortably fits VMEM (amortize grid-step
    # overhead) but keep >= 2 grid steps when possible for v7x's two TCs.
    if rows <= 16:
        tile_rows = rows                              # single full-extent block
    else:
        tile_rows = min(MAX_TILE_ROWS, _round_up(pl.cdiv(rows, 2), 8))
    grid = (pl.cdiv(rows, tile_rows),)

    itemsize = jnp.dtype(x_sm.dtype).itemsize
    cost = pl.CostEstimate(
        flops=2 * b_pad,
        transcendentals=2 * b_pad,
        bytes_accessed=(S + C + S) * b_pad * itemsize,
    )

    dx3 = pl.pallas_call(
        _unicycle_kernel,
        out_shape=jax.ShapeDtypeStruct((S, rows, 128), x_sm.dtype),
        grid=grid,
        in_specs=[
            pl.BlockSpec((S, tile_rows, 128), lambda i: (0, i, 0)),
            pl.BlockSpec((C, tile_rows, 128), lambda i: (0, i, 0)),
        ],
        out_specs=pl.BlockSpec((S, tile_rows, 128), lambda i: (0, i, 0)),
        compiler_params=pltpu.CompilerParams(
            dimension_semantics=("parallel",)),
        cost_estimate=cost,
    )(x3, u3)

    dx_sm = dx3.reshape(S, b_pad)
    if b_pad != B:
        dx_sm = dx_sm[:, :B]
    return dx_sm


def unicycle_forward_ref(x, u):
    """Pure-JAX reference mirroring the PyTorch forward (batch-major)."""
    theta = x[:, 2]
    v = u[:, 0]
    w = u[:, 1]
    return jnp.stack([v * jnp.cos(theta), v * jnp.sin(theta), w],
                     axis=1).astype(x.dtype)


def unicycle_forward(x, u):
    """Batch-major API matching the PyTorch module: x (B,3), u (B,2) -> (B,3).

    Tiny batches use the fused XLA path (pallas_call fixed cost would
    dominate).  Large batches use the state-major Pallas kernel; the two
    transposes here exist only for API compatibility -- callers that can keep
    state-major (3, B) / (2, B) data should call
    unicycle_forward_state_major directly and skip them entirely.
    """
    B = x.shape[0]
    if B < _SMALL_BATCH:
        return unicycle_forward_ref(x, u)
    dx_sm = unicycle_forward_state_major(x.T, u.T)
    return dx_sm.T


if __name__ == "__main__":
    key = jax.random.PRNGKey(0)
    kx, ku, kx2, ku2, kx3, ku3 = jax.random.split(key, 6)

    # 1) Small batch (typical module usage) -> fast fused-XLA path.
    B = 8
    x = jax.random.normal(kx, (B, 3), dtype=jnp.float32)
    u = jax.random.normal(ku, (B, 2), dtype=jnp.float32)
    dx = jax.block_until_ready(unicycle_forward(x, u))
    ref = unicycle_forward_ref(x, u)
    assert dx.shape == (B, 3) and dx.dtype == jnp.float32
    assert jnp.allclose(dx, ref, atol=1e-5, rtol=1e-5)

    # 2) State-major Pallas kernel on a small aligned batch (single block).
    B2 = 1024
    x_sm = jax.random.normal(kx2, (3, B2), dtype=jnp.float32)
    u_sm = jax.random.normal(ku2, (2, B2), dtype=jnp.float32)
    dx_sm = jax.block_until_ready(unicycle_forward_state_major(x_sm, u_sm))
    ref_sm = unicycle_forward_ref(x_sm.T, u_sm.T).T
    assert dx_sm.shape == (3, B2)
    assert jnp.allclose(dx_sm, ref_sm, atol=1e-5, rtol=1e-5)

    # 3) Batch-major wrapper on a ragged batch large enough to take the
    #    Pallas path (exercises padding, 2 grid steps, partial last block).
    B3 = 8269
    xb = jax.random.normal(kx3, (B3, 3), dtype=jnp.float32)
    ub = jax.random.normal(ku3, (B3, 2), dtype=jnp.float32)
    dxb = jax.block_until_ready(unicycle_forward(xb, ub))
    refb = unicycle_forward_ref(xb, ub)
    assert dxb.shape == (B3, 3)
    assert jnp.allclose(dxb, refb, atol=1e-5, rtol=1e-5)

    print("KERNEL_OK")
</pallas_src>

<mosaic_0001>
module attributes {stable_mosaic.version = 11 : i64} {
  func.func @_unicycle_kernel(%arg0: i32, %arg1: memref<3x8x128xf32, #tpu.memory_space<vmem>>, %arg2: memref<2x8x128xf32, #tpu.memory_space<vmem>>, %arg3: memref<3x8x128xf32, #tpu.memory_space<vmem>>) attributes {dimension_semantics = [#tpu.dimension_semantics<parallel>], iteration_bounds = array<i64: 1>, scalar_prefetch = 0 : i64, scratch_operands = 0 : i64, tpu.core_type = #tpu.core_type<tc>, window_params = [{transform_indices = @transform_0, window_bounds = array<i64: 3, 8, 128>}, {transform_indices = @transform_1, window_bounds = array<i64: 2, 8, 128>}, {transform_indices = @transform_2, window_bounds = array<i64: 3, 8, 128>}]} {
    %c2 = arith.constant 2 : index
    %c0 = arith.constant 0 : index
    %c0_0 = arith.constant 0 : index
    %0 = vector.load %arg1[%c2, %c0, %c0_0] : memref<3x8x128xf32, #tpu.memory_space<vmem>>, vector<1x8x128xf32>
    %1 = vector.shape_cast %0 : vector<1x8x128xf32> to vector<8x128xf32>
    %c0_1 = arith.constant 0 : index
    %c0_2 = arith.constant 0 : index
    %c0_3 = arith.constant 0 : index
    %2 = vector.load %arg2[%c0_1, %c0_2, %c0_3] : memref<2x8x128xf32, #tpu.memory_space<vmem>>, vector<1x8x128xf32>
    %3 = vector.shape_cast %2 : vector<1x8x128xf32> to vector<8x128xf32>
    %c1 = arith.constant 1 : index
    %c0_4 = arith.constant 0 : index
    %c0_5 = arith.constant 0 : index
    %4 = vector.load %arg2[%c1, %c0_4, %c0_5] : memref<2x8x128xf32, #tpu.memory_space<vmem>>, vector<1x8x128xf32>
    %5 = vector.shape_cast %4 : vector<1x8x128xf32> to vector<8x128xf32>
    %6 = math.cos %1 : vector<8x128xf32>
    %7 = arith.mulf %3, %6 : vector<8x128xf32>
    %c0_6 = arith.constant 0 : index
    %c0_7 = arith.constant 0 : index
    %c0_8 = arith.constant 0 : index
    %8 = vector.load %arg3[%c0_6, %c0_7, %c0_8] : memref<3x8x128xf32, #tpu.memory_space<vmem>>, vector<1x8x128xf32>
    %9 = vector.shape_cast %8 : vector<1x8x128xf32> to vector<8x128xf32>
    %10 = vector.shape_cast %7 : vector<8x128xf32> to vector<1x8x128xf32>
    tpu.vector_store %arg3[%c0_6, %c0_7, %c0_8], %10 {strides = array<i32>} : memref<3x8x128xf32, #tpu.memory_space<vmem>>, vector<1x8x128xf32>,
    %11 = math.sin %1 : vector<8x128xf32>
    %12 = arith.mulf %3, %11 : vector<8x128xf32>
    %c1_9 = arith.constant 1 : index
    %c0_10 = arith.constant 0 : index
    %c0_11 = arith.constant 0 : index
    %13 = vector.load %arg3[%c1_9, %c0_10, %c0_11] : memref<3x8x128xf32, #tpu.memory_space<vmem>>, vector<1x8x128xf32>
    %14 = vector.shape_cast %13 : vector<1x8x128xf32> to vector<8x128xf32>
    %15 = vector.shape_cast %12 : vector<8x128xf32> to vector<1x8x128xf32>
    tpu.vector_store %arg3[%c1_9, %c0_10, %c0_11], %15 {strides = array<i32>} : memref<3x8x128xf32, #tpu.memory_space<vmem>>, vector<1x8x128xf32>,
    %c2_12 = arith.constant 2 : index
    %c0_13 = arith.constant 0 : index
    %c0_14 = arith.constant 0 : index
    %16 = vector.load %arg3[%c2_12, %c0_13, %c0_14] : memref<3x8x128xf32, #tpu.memory_space<vmem>>, vector<1x8x128xf32>
    %17 = vector.shape_cast %16 : vector<1x8x128xf32> to vector<8x128xf32>
    %18 = vector.shape_cast %5 : vector<8x128xf32> to vector<1x8x128xf32>
    tpu.vector_store %arg3[%c2_12, %c0_13, %c0_14], %18 {strides = array<i32>} : memref<3x8x128xf32, #tpu.memory_space<vmem>>, vector<1x8x128xf32>,
    return
  }
  func.func @transform_0(%arg0: i32) -> (i32, i32, i32) {
    %c0_i32 = arith.constant 0 : i32
    %c0_i32_0 = arith.constant 0 : i32
    %c0_i32_1 = arith.constant 0 : i32
    return %c0_i32, %arg0, %c0_i32_0 : i32, i32, i32
  }
  func.func @transform_1(%arg0: i32) -> (i32, i32, i32) {
    %c0_i32 = arith.constant 0 : i32
    %c0_i32_0 = arith.constant 0 : i32
    %c0_i32_1 = arith.constant 0 : i32
    return %c0_i32, %arg0, %c0_i32_0 : i32, i32, i32
  }
  func.func @transform_2(%arg0: i32) -> (i32, i32, i32) {
    %c0_i32 = arith.constant 0 : i32
    %c0_i32_0 = arith.constant 0 : i32
    %c0_i32_1 = arith.constant 0 : i32
    return %c0_i32, %arg0, %c0_i32_0 : i32, i32, i32
  }
}

</mosaic_0001>

<bundles_post_ra>
// kernel: tpu_custom_call.1
= control target key start
LH: loop header
LB: loop body
LE: loop exit
PB: predicated region body
PF: predicated region fallthrough
CT: control target
= control target key end

     0   :  { %7 = vsyncpa [#allocation3], 0  ;;  %s468_s0 = inlined_call_operand.hbm [shape: f32[3,8,128], index: 0, kind: input, shape index: {}]   ;;  %s469_s1 = inlined_call_operand.hbm [shape: f32[2,8,128], index: 1, kind: input, shape index: {}]   ;;  %s470_s2 = inlined_call_operand.hbm [shape: f32[3,8,128], index: 2, kind: output, shape index: {}]  }
   0x1   :  { %8 = vsyncpa [#allocation6], 0 }
   0x2   :  { %9 = vsyncpa [#allocation4], 0  ;;  %s376_s9 = smov [#allocation2]   ;;  %s304_s13 = scalar_lea.hbm %s468_s0, 384 }
   0x3   :  { %s15_s10 = sshll.u32 %s376_s9, 4  ;;  %p305_p0 = scmp.ne.s32.totalorder %s468_s0, %s304_s13  ;;  %s16_s10 = int_to_ptr.vmem [resolvable:$true] %s15_s10 }
   0x4   :  { %p308_p1 = scmp.lt.u32.totalorder %s304_s13, %s468_s0 }
   0x6   :  { %p310_p2 = pnand %p308_p1, %p305_p0 }
   0x8   :  { %313 = shalt.err (!%p310_p2)
}
   0x9   :  { %s314_s18 = scalar_lea.vmem %s16_s10, 384  ;;  %p319_p4 = scmp.lt.s32.totalorder %s16_s10, %s16_s10 }
   0xa   :  { %p315_p3 = scmp.ne.s32.totalorder %s16_s10, %s314_s18  ;;  %p320_p5 = scmp.lt.s32.totalorder %s314_s18, %s314_s18 }
   0xc   :  { %p321_p6 = por %p320_p5, %p319_p4 }
   0xe   :  { %p322_p7 = pnand %p321_p6, %p315_p3 }
  0x10   :  { %325 = shalt.err (!%p322_p7)
}
  0x11   :  { %s377_s19 = smov 128   ;;  %s378_s20 = smov 8  }
  0x12   :  { %21 = dma.hbm_to_vmem [thread:$0]  %s468_s0, 384, %s16_s10, [#allocation3], %s377_s19, %s377_s19, %s378_s20  }
  0x13   :  { %s379_s23 = smov [#allocation5]   ;;  %s326_s27 = scalar_lea.hbm %s469_s1, 256 }
  0x14   :  { %s27_s24 = sshll.u32 %s379_s23, 4  ;;  %p327_p8 = scmp.ne.s32.totalorder %s469_s1, %s326_s27  ;;  %s28_s24 = int_to_ptr.vmem [resolvable:$true] %s27_s24 }
  0x15   :  { %p330_p9 = scmp.lt.u32.totalorder %s326_s27, %s469_s1 }
  0x17   :  { %p332_p10 = pnand %p330_p9, %p327_p8 }
  0x19   :  { %335 = shalt.err (!%p332_p10)
}
  0x1a   :  { %s336_s4 = scalar_lea.vmem %s28_s24, 256  ;;  %p341_p12 = scmp.lt.s32.totalorder %s28_s24, %s28_s24 }
  0x1b   :  { %p337_p11 = scmp.ne.s32.totalorder %s28_s24, %s336_s4  ;;  %p342_p13 = scmp.lt.s32.totalorder %s336_s4, %s336_s4 }
  0x1d   :  { %p343_p0 = por %p342_p13, %p341_p12 }
  0x1f   :  { %p344_p1 = pnand %p343_p0, %p337_p11 }
  0x21   :  { %347 = shalt.err (!%p344_p1)
}
  0x22   :  { %33 = dma.hbm_to_vmem [thread:$0]  %s469_s1, 256, %s28_s24, [#allocation6], %s377_s19, %s377_s19, %s378_s20  }
  0x23   :  { %370 = dma.done.wait [#allocation3], 384  }
  0x24   :  { %371 = vsyncadd [#allocation3], 4294966912 }
  0x25   :  { %372 = dma.done.wait [#allocation6], 256  }
  0x26   :  { %373 = vsyncadd [#allocation6], 4294967040  ;;  %v432_v0 = vld [vmem:[#allocation2 + $0x10] sm:$0xff]  ;;  %v44_v1 = vld [vmem:[#allocation5 + $0x8] sm:$0xff]  ;;  %v380_v13 = vmov 683565275  }
  0x27   :  { %v48_v2 = vand.u32 2139095040, %v432_v0  ;;  %258 = vst [vmem:[#allocation7 + $0x10] sm:$0xff] %v44_v1  ;;  %v45_v4 = vand.u32 2147483647, %v432_v0  ;;  %v381_v15 = vmov 2475754826   ;;  %vm137_vm15 = vweird.f32 %v432_v0 }
  0x28   :  { %v382_v17 = vmov 2131351028   ;;  %v383_v19 = vmov 2102212464   ;;  %v384_v21 = vmov 920167782  }
  0x29   :  { %v49_v3 = vshrl.u32 %v48_v2, 23  ;;  %v52_v7 = vand.u32 8388607, %v45_v4  ;;  %v385_v28 = vmov 1326507024   ;;  %vm47_vm7 = vcmp.lt.s32.totalorder %v432_v0, 0 }
  0x2a   :  { %vm46_vm8 = vcmp.le.f32.partialorder %v45_v4, 0.7853982  ;;  %s386_s1 = smov [#allocation7]  }
  0x2b   :  { %v277_v5 = vadd.s32 4294967169, %v49_v3  ;;  %v53_v10 = vor.u32 8388608, %v52_v7  ;;  %s264_s6 = sshll.u32 %s386_s1, 4  ;;  %s265_s6 = int_to_ptr.vmem [resolvable:$true] %s264_s6 }
  0x2c   :  { %s348_s7 = scalar_lea.vmem %s265_s6, 384  ;;  %p353_p3 = scmp.lt.s32.totalorder %s265_s6, %s265_s6 }
  0x2d   :  { %v55_v6 = vadd.s32 1, %v277_v5  ;;  %v93_v30 = vshll.u32 %v53_v10, 8  ;;  %p349_p2 = scmp.ne.s32.totalorder %s265_s6, %s348_s7  ;;  %p354_p4 = scmp.lt.s32.totalorder %s348_s7, %s348_s7 }
  0x2f   :  { %vm56_vm0 = vcmp.gt.s32.totalorder %v55_v6, 0  ;;  %p355_p5 = por %p354_p4, %p353_p3 }
  0x30   :  { %v57_v8 = vsel %vm56_vm0, %v55_v6, 0 }
  0x31   :  { %v59_v9 = vand.u32 31, %v57_v8  ;;  %v58_v11 = vshrl.u32 %v57_v8, 5  ;;  %p356_p6 = pnand %p355_p5, %p349_p2 }
  0x33   :  { %v60_v12 = vsub.s32 32, %v59_v9  ;;  %v62_v14 = vshll.u32 %v380_v13, %v59_v9  ;;  %v65_v16 = vshll.u32 %v381_v15, %v59_v9  ;;  %v68_v18 = vshll.u32 %v382_v17, %v59_v9 }
  0x34   :  { %v71_v20 = vshll.u32 %v383_v19, %v59_v9  ;;  %v74_v22 = vshll.u32 %v384_v21, %v59_v9  ;;  %vm77_vm1 = vcmp.lt.s32.totalorder %v58_v11, 1  ;;  %vm80_vm2 = vcmp.lt.s32.totalorder %v58_v11, 4 }
  0x35   :  { %v61_v23 = vshrl.u32 %v380_v13, %v60_v12  ;;  %v63_v24 = vshrl.u32 %v381_v15, %v60_v12  ;;  %v66_v25 = vshrl.u32 %v382_v17, %v60_v12  ;;  %v69_v26 = vshrl.u32 %v383_v19, %v60_v12 }
  0x36   :  { %v72_v27 = vshrl.u32 %v384_v21, %v60_v12  ;;  %v75_v29 = vshrl.u32 %v385_v28, %v60_v12  ;;  %vm78_vm3 = vcmp.lt.s32.totalorder %v58_v11, 2  ;;  %vm79_vm4 = vcmp.lt.s32.totalorder %v58_v11, 3 }
  0x37   :  { %v64_v31 = vor.u32 %v63_v24, %v62_v14  ;;  %v67_v32 = vor.u32 %v66_v25, %v65_v16  ;;  %v70_v33 = vor.u32 %v69_v26, %v68_v18 }
  0x38   :  { %v73_v34 = vor.u32 %v72_v27, %v71_v20  ;;  %v76_v35 = vor.u32 %v75_v29, %v74_v22  ;;  %v42_v29 = vld [vmem:[#allocation5] sm:$0xff] }
  0x39   :  { %v81_v36 = vsel %vm77_vm1, %v61_v23, %v64_v31  ;;  %v82_v37 = vsel %vm80_vm2, %v70_v33, 2102212464  ;;  %v85_v38 = vsel %vm77_vm1, %v64_v31, %v67_v32  ;;  %v89_v39 = vsel %vm77_vm1, %v67_v32, %v70_v33 }
  0x3a   :  { %v83_v40 = vsel %vm79_vm4, %v67_v32, %v82_v37  ;;  %v86_v41 = vsel %vm80_vm2, %v73_v34, 920167782  ;;  %v90_v42 = vsel %vm80_vm2, %v76_v35, 1326507024 }
  0x3b   :  { %v87_v43 = vsel %vm79_vm4, %v70_v33, %v86_v41  ;;  %v91_v44 = vsel %vm79_vm4, %v73_v34, %v90_v42  ;;  %v84_v45 = vsel %vm78_vm3, %v81_v36, %v83_v40 }
  0x3c   :  { %v88_v46 = vsel %vm78_vm3, %v85_v38, %v87_v43  ;;  %v92_v47 = vsel %vm78_vm3, %v89_v39, %v91_v44  ;;  %v100_v52 = vmul.u32 %v93_v30, %v84_v45 }
  0x3d   :  { %v438_v48 = vmul.u32.u64.low %v93_v30, %v92_v47  ;;  %v439_v49 = vmul.u32.u64.high %v93_v30, %v92_v47, %v438_v48  ;;  %v441_v50 = vmul.u32.u64.low %v93_v30, %v88_v46  ;;  %v442_v51 = vmul.u32.u64.high %v93_v30, %v88_v46, %v441_v50 }
  0x3f   :  { %vm102_vm5 = vc.u32 %v439_v49, %v441_v50  ;;  %v103_v53 = vadd.s32 1, %v442_v51  ;;  %v101_v1 = vadd.s32 %v441_v50, %v439_v49 }
  0x41   :  { %v104_v54 = vsel %vm102_vm5, %v103_v53, %v442_v51 }
  0x42   :  { %v105_v55 = vadd.s32 %v104_v54, %v100_v52 }
  0x44   :  { %v106_v56 = vadd.s32 536870912, %v105_v55 }
  0x46   :  { %v107_v57 = vshrl.u32 %v106_v56, 30 }
  0x48   :  { %v108_v58 = vshll.u32 %v107_v57, 30  ;;  %v131_v14 = vsub.s32 4, %v107_v57 }
  0x4a   :  { %v109_v59 = vsub.s32 %v105_v55, %v108_v58  ;;  %v132_v17 = vsel %vm47_vm7, %v131_v14, %v107_v57 }
  0x4b   :  { %v134_v20 = vsel %vm46_vm8, 0, %v132_v17 }
  0x4c   :  { %v111_v60 = vsub.s32 0, %v109_v59  ;;  %v243_v21 = vadd.s32 3, %v134_v20  ;;  %v138_v22 = vand.u32 3, %v134_v20 }
  0x4e   :  { %v278_v61 = vmin.u32 %v111_v60, %v109_v59  ;;  %v244_v23 = vand.u32 3, %v243_v21  ;;  %vm143_vm9 = vcmp.eq.s32.totalorder %v138_v22, 2  ;;  %vm140_vm11 = vcmp.eq.s32.totalorder %v138_v22, 0 }
  0x4f   :  { %vm139_vm13 = vcmp.lt.s32.totalorder %v138_v22, 2 }
  0x50   :  { %v113_v62 = vclz %v278_v61  ;;  %vm249_vm10 = vcmp.eq.s32.totalorder %v244_v23, 2  ;;  %vm246_vm12 = vcmp.eq.s32.totalorder %v244_v23, 0  ;;  %vm245_vm14 = vcmp.lt.s32.totalorder %v244_v23, 2 }
  0x52   :  { %v279_v63 = vadd.s32 4294967294, %v113_v62 }
  0x54   :  { %vm280_vm6 = vcmp.lt.s32.totalorder %v279_v63, 0 }
  0x55   :  { %v116_v2 = vsel %vm280_vm6, 0, %v279_v63 }
  0x56   :  { %v117_v3 = vsub.s32 32, %v116_v2  ;;  %v118_v5 = vshll.u32 %v109_v59, %v116_v2  ;;  %v121_v6 = vsub.s32 4294967266, %v116_v2 }
  0x58   :  { %v119_v7 = vshrl.u32 %v101_v1, %v117_v3  ;;  %v122_v8 = vadd.s32 127, %v121_v6 }
  0x5a   :  { %v120_v9 = vor.u32 %v119_v7, %v118_v5  ;;  %v123_v10 = vshll.u32 %v122_v8, 23 }
  0x5c   :  { %v124_v11 = vor.u32 4788187, %v123_v10  ;;  %v127_v12 = vcvt.s32.f32 %v120_v9 }
  0x5e   :  { %v125_v13 = vand.u32 2147483647, %v124_v11 }
  0x60   :  { %v128_v15 = vmul.f32 %v127_v12, %v125_v13 }
  0x62   :  { %v129_v16 = vxor.u32 2147483648, %v128_v15 }
  0x64   :  { %v130_v18 = vsel %vm47_vm7, %v129_v16, %v128_v15 }
  0x65   :  { %v133_v19 = vsel %vm46_vm8, %v432_v0, %v130_v18 }
  0x66   :  { %300 = vcosq.f32 %v133_v19 }
  0x67   :  { %302 = vsinq.f32 %v133_v19 }
  0x70   :  { %v301_v24 = vpop.eup %300 }
  0x71   :  { %v303_v25 = vpop.eup %302  ;;  %v144_v26 = vxor.u32 2147483648, %v301_v24 }
  0x72   :  { %v141_v4 = vxor.u32 2147483648, %v303_v25 }
  0x73   :  { %v145_v27 = vsel %vm143_vm9, %v144_v26, %v303_v25  ;;  %v251_v28 = vsel %vm249_vm10, %v144_v26, %v303_v25 }
  0x74   :  { %v142_v30 = vsel %vm140_vm11, %v301_v24, %v141_v4  ;;  %v248_v31 = vsel %vm246_vm12, %v301_v24, %v141_v4 }
  0x75   :  { %v146_v32 = vsel %vm139_vm13, %v142_v30, %v145_v27  ;;  %v252_v33 = vsel %vm245_vm14, %v248_v31, %v251_v28 }
  0x76   :  { %v147_v34 = vsel %vm137_vm15, nan, %v146_v32  ;;  %v253_v35 = vsel %vm137_vm15, nan, %v252_v33 }
  0x77   :  { %v148_v36 = vmul.f32 %v147_v34, %v42_v29  ;;  %v254_v37 = vmul.f32 %v253_v35, %v42_v29 }
  0x79   :  { %149 = vst [vmem:[#allocation7] sm:$0xff] %v148_v36  ;;  %256 = vst [vmem:[#allocation7 + $0x8] sm:$0xff] %v254_v37 }
  0x7a   :  { %359 = shalt.err (!%p356_p6)
}
  0x7b   :  { %s360_s10 = scalar_lea.hbm %s470_s2, 384 }
  0x7c   :  { %p361_p7 = scmp.ne.s32.totalorder %s470_s2, %s360_s10  ;;  %p364_p8 = scmp.lt.u32.totalorder %s360_s10, %s470_s2 }
  0x7e   :  { %p366_p9 = pnand %p364_p8, %p361_p7 }
  0x80   :  { %369 = shalt.err (!%p366_p9)
}
  0x81   :  { %270 = dma.vmem_to_hbm [thread:$0]  %s265_s6, 384, %s470_s2, [#allocation4], %s377_s19, %s377_s19, %s378_s20  }
  0x82   :  { %374 = dma.done.wait [#allocation4], 384  }
  0x83   :  { %375 = vsyncadd [#allocation4], 4294966912 }
  0x84   :  { %274 = vsyncpa [#allocation3], 1 }
  0x85   :  { %275 = vsyncpa [#allocation6], 1 }
  0x86   :  { %276 = vsyncpa [#allocation4], 1 }

</bundles_post_ra>
